<compile_context>
chip_gen: v5e
topology: v5e:2x2
jax: 0.10.0
libtpu: 0.0.40
codegen_flags: <defaults>
</compile_context>

<pallas_src>
import jax
import jax.numpy as jnp
import numpy as np
from jax.experimental import pallas as pl
from jax.experimental.pallas import tpu as pltpu


def basic_block_kernel(x_ref, t1_ref, t2_ref, sb_ref, shift_ref, o_ref):
    # x_ref     : (M, L)     lane-dense input rows; M = N*H, L = W*C (mult of 128)
    # t1/t2_ref : (3L, L)    block-Toeplitz conv weights (dy-major, dx + W-edge
    #                        padding baked in)
    # sb_ref    : (4, L)     folded BN params tiled across W: [s1, b1, s2, b2]
    # shift_ref : (2, M, M)  [S_prev, S_next] row-shift matrices with the image
    #                        H-edge zeros baked in
    # o_ref     : (M, L)
    x = x_ref[...].astype(jnp.float32)
    s_prev = shift_ref[0]          # (M, M): row m <- row m-1 (0 at top edge)
    s_next = shift_ref[1]          # (M, M): row m <- row m+1 (0 at bottom edge)
    sb = sb_ref[...]               # (4, L)

    def conv3x3(a, t_ref):
        # dy taps via MXU row shifts (boundary masks already inside S_*)
        up = jnp.dot(s_prev, a, preferred_element_type=jnp.float32)   # x[h-1]
        dn = jnp.dot(s_next, a, preferred_element_type=jnp.float32)   # x[h+1]
        # single im2col matmul: (M, 3L) @ (3L, L); dx taps live inside t_ref
        patches = jnp.concatenate([up, a, dn], axis=1)
        return jnp.dot(patches, t_ref[...], preferred_element_type=jnp.float32)

    # conv1 -> bn1 -> relu  (intermediate stays in registers, no VMEM scratch)
    y = conv3x3(x, t1_ref)
    y = jnp.maximum(y * sb[0:1, :] + sb[1:2, :], 0.0)

    # conv2 -> bn2 -> +identity -> relu
    z = conv3x3(y, t2_ref)
    z = z * sb[2:3, :] + sb[3:4, :]
    o_ref[...] = jnp.maximum(z + x, 0.0).astype(o_ref.dtype)


def _build_toeplitz_weights(w_hwio, width):
    """(3, 3, Cin, Cout) HWIO conv weight -> (3*width*Cin, width*Cout) matrix.

    Row block dy multiplies the image row h+dy-1.  Within a block,
    T[wi*Cin+ci, wo*Cout+co] = w[dy, wi-wo+1, ci, co], zero outside the 3-tap
    band and at the left/right image edges (i.e. 'same' padding along W).
    """
    kh, kw, cin, cout = w_hwio.shape
    t = jnp.zeros((kh, width * cin, width * cout), jnp.float32)
    for dx in range(kw):
        for wo in range(width):
            wi = wo + dx - 1
            if 0 <= wi < width:
                t = t.at[:, wi * cin:(wi + 1) * cin,
                         wo * cout:(wo + 1) * cout].set(
                             w_hwio[:, dx].astype(jnp.float32))
    return t.reshape(kh * width * cin, width * cout)


def _build_row_shifts(n, h):
    """(2, M, M) matrices: S_prev@X -> rows h-1, S_next@X -> rows h+1,
    zero rows where the neighbour falls outside the same image (H-edge pad)."""
    m = n * h
    r = jnp.arange(m)[:, None]
    c = jnp.arange(m)[None, :]
    has_up = (r % h) != 0
    has_dn = (r % h) != (h - 1)
    s_prev = jnp.where((c == r - 1) & has_up, 1.0, 0.0)
    s_next = jnp.where((c == r + 1) & has_dn, 1.0, 0.0)
    return jnp.stack([s_prev, s_next]).astype(jnp.float32)


def basic_block(x_nhwc, w1, s1, b1, w2, s2, b2):
    """Fused BasicBlock forward.  x_nhwc: (N, H, W, C) f32; w*: (3,3,C,C) HWIO;
    s*/b*: (C,) folded BN scale/bias.  Returns (N, H, W, C)."""
    N, H, W, C = x_nhwc.shape
    if w1.shape != (3, 3, C, C) or w2.shape != (3, 3, C, C):
        raise ValueError("only the default BasicBlock config is supported "
                         "(3x3, stride=1, dilation=1, planes==inplanes, "
                         "use_1x1=False)")
    L = W * C
    if L % 128 != 0:
        raise ValueError("W*C must be a multiple of 128 for the lane-dense "
                         "layout (got %d)" % L)
    M = N * H

    x2d = x_nhwc.reshape(M, L).astype(jnp.float32)
    t1 = _build_toeplitz_weights(w1, W)            # (3L, L)
    t2 = _build_toeplitz_weights(w2, W)            # (3L, L)
    shifts = _build_row_shifts(N, H)               # (2, M, M)
    sb = jnp.stack([jnp.tile(s1.astype(jnp.float32), W),
                    jnp.tile(b1.astype(jnp.float32), W),
                    jnp.tile(s2.astype(jnp.float32), W),
                    jnp.tile(b2.astype(jnp.float32), W)])   # (4, L)

    out2d = pl.pallas_call(
        basic_block_kernel,
        out_shape=jax.ShapeDtypeStruct((M, L), x_nhwc.dtype),
        grid_spec=pltpu.PrefetchScalarGridSpec(
            num_scalar_prefetch=0,
            grid=(1,),
            in_specs=[
                pl.BlockSpec((M, L), lambda i: (0, 0)),
                pl.BlockSpec((3 * L, L), lambda i: (0, 0)),
                pl.BlockSpec((3 * L, L), lambda i: (0, 0)),
                pl.BlockSpec((4, L), lambda i: (0, 0)),
                pl.BlockSpec((2, M, M), lambda i: (0, 0, 0)),
            ],
            out_specs=pl.BlockSpec((M, L), lambda i: (0, 0)),
        ),
        compiler_params=pltpu.CompilerParams(
            dimension_semantics=("arbitrary",)),
    )(x2d, t1, t2, sb, shifts)
    return out2d.reshape(N, H, W, C)


def ref_forward(x, w1, s1, b1, w2, s2, b2):
    """Plain-JAX reference (NHWC / HWIO)."""
    dn = jax.lax.conv_dimension_numbers(x.shape, w1.shape,
                                        ('NHWC', 'HWIO', 'NHWC'))
    y = jax.lax.conv_general_dilated(x, w1, (1, 1), ((1, 1), (1, 1)),
                                     dimension_numbers=dn,
                                     precision=jax.lax.Precision.HIGHEST)
    y = jnp.maximum(y * s1 + b1, 0.0)
    z = jax.lax.conv_general_dilated(y, w2, (1, 1), ((1, 1), (1, 1)),
                                     dimension_numbers=dn,
                                     precision=jax.lax.Precision.HIGHEST)
    return jnp.maximum(z * s2 + b2 + x, 0.0)


def fold_bn(gamma, beta, mean, var, eps=1e-5):
    scale = gamma / jnp.sqrt(var + eps)
    bias = beta - mean * scale
    return scale, bias


if __name__ == "__main__":
    N, C, H, W = 2, 8, 16, 16   # inplanes = planes = 8 ; W*C = 128 lanes
    key = jax.random.PRNGKey(0)
    keys = jax.random.split(key, 11)

    # deterministic synthetic parameters (PyTorch conv shape is (Cout,Cin,3,3);
    # generated directly in HWIO for the kernel)
    w1 = jax.random.normal(keys[0], (3, 3, C, C), jnp.float32) * 0.1
    w2 = jax.random.normal(keys[1], (3, 3, C, C), jnp.float32) * 0.1
    g1 = jax.random.uniform(keys[2], (C,), jnp.float32, 0.5, 1.5)
    be1 = jax.random.normal(keys[3], (C,), jnp.float32) * 0.1
    m1 = jax.random.normal(keys[4], (C,), jnp.float32) * 0.1
    v1 = jax.random.uniform(keys[5], (C,), jnp.float32, 0.5, 1.5)
    g2 = jax.random.uniform(keys[6], (C,), jnp.float32, 0.5, 1.5)
    be2 = jax.random.normal(keys[7], (C,), jnp.float32) * 0.1
    m2 = jax.random.normal(keys[8], (C,), jnp.float32) * 0.1
    v2 = jax.random.uniform(keys[9], (C,), jnp.float32, 0.5, 1.5)

    s1, b1 = fold_bn(g1, be1, m1, v1)
    s2, b2 = fold_bn(g2, be2, m2, v2)

    # input in PyTorch NCHW, transposed to NHWC for the kernel
    x_nchw = jax.random.normal(keys[10], (N, C, H, W), jnp.float32)
    x_nhwc = jnp.transpose(x_nchw, (0, 2, 3, 1))

    out = basic_block(x_nhwc, w1, s1, b1, w2, s2, b2)
    out = jax.block_until_ready(out)

    ref = ref_forward(x_nhwc, w1, s1, b1, w2, s2, b2)
    err = float(jnp.max(jnp.abs(out - ref)))
    if not np.isfinite(err) or err > 5e-4:
        raise AssertionError(f"mismatch vs reference, max abs err = {err}")

    print("KERNEL_OK")
</pallas_src>

<mosaic_0001>
module attributes {stable_mosaic.version = 11 : i64} {
  func.func @basic_block_kernel(%arg0: i32, %arg1: memref<32x128xf32, #tpu.memory_space<vmem>>, %arg2: memref<384x128xf32, #tpu.memory_space<vmem>>, %arg3: memref<384x128xf32, #tpu.memory_space<vmem>>, %arg4: memref<4x128xf32, #tpu.memory_space<vmem>>, %arg5: memref<2x32x32xf32, #tpu.memory_space<vmem>>, %arg6: memref<32x128xf32, #tpu.memory_space<vmem>>) attributes {dimension_semantics = [#tpu.dimension_semantics<arbitrary>], iteration_bounds = array<i64: 1>, scalar_prefetch = 0 : i64, scratch_operands = 0 : i64, tpu.core_type = #tpu.core_type<tc>, window_params = [{pipeline_mode = #tpu.pipeline_mode<synchronous>, transform_indices = @transform_0, window_bounds = array<i64: 32, 128>}, {pipeline_mode = #tpu.pipeline_mode<synchronous>, transform_indices = @transform_1, window_bounds = array<i64: 384, 128>}, {pipeline_mode = #tpu.pipeline_mode<synchronous>, transform_indices = @transform_2, window_bounds = array<i64: 384, 128>}, {pipeline_mode = #tpu.pipeline_mode<synchronous>, transform_indices = @transform_3, window_bounds = array<i64: 4, 128>}, {pipeline_mode = #tpu.pipeline_mode<synchronous>, transform_indices = @transform_4, window_bounds = array<i64: 2, 32, 32>}, {pipeline_mode = #tpu.pipeline_mode<synchronous>, transform_indices = @transform_5, window_bounds = array<i64: 32, 128>}]} {
    %c0 = arith.constant 0 : index
    %c0_0 = arith.constant 0 : index
    %0 = vector.load %arg1[%c0, %c0_0] : memref<32x128xf32, #tpu.memory_space<vmem>>, vector<32x128xf32>
    %c0_1 = arith.constant 0 : index
    %c0_2 = arith.constant 0 : index
    %c0_3 = arith.constant 0 : index
    %1 = vector.load %arg5[%c0_1, %c0_2, %c0_3] : memref<2x32x32xf32, #tpu.memory_space<vmem>>, vector<1x32x32xf32>
    %2 = vector.shape_cast %1 : vector<1x32x32xf32> to vector<32x32xf32>
    %c1 = arith.constant 1 : index
    %c0_4 = arith.constant 0 : index
    %c0_5 = arith.constant 0 : index
    %3 = vector.load %arg5[%c1, %c0_4, %c0_5] : memref<2x32x32xf32, #tpu.memory_space<vmem>>, vector<1x32x32xf32>
    %4 = vector.shape_cast %3 : vector<1x32x32xf32> to vector<32x32xf32>
    %c0_6 = arith.constant 0 : index
    %c0_7 = arith.constant 0 : index
    %5 = vector.load %arg4[%c0_6, %c0_7] : memref<4x128xf32, #tpu.memory_space<vmem>>, vector<4x128xf32>
    %cst = arith.constant dense<0.000000e+00> : vector<32x128xf32>
    %6 = tpu.matmul %2, %0, %cst {dimension_numbers = #tpu.dot_dimension_numbers<[1], [0], [0], [1], [0, 0, 1, 1], [], []>} : vector<32x32xf32>, vector<32x128xf32>, vector<32x128xf32> -> vector<32x128xf32>
    %cst_8 = arith.constant dense<0.000000e+00> : vector<32x128xf32>
    %7 = tpu.matmul %4, %0, %cst_8 {dimension_numbers = #tpu.dot_dimension_numbers<[1], [0], [0], [1], [0, 0, 1, 1], [], []>} : vector<32x32xf32>, vector<32x128xf32>, vector<32x128xf32> -> vector<32x128xf32>
    %8 = tpu.concatenate %6, %0, %7 in 1 : vector<32x128xf32>, vector<32x128xf32>, vector<32x128xf32> -> vector<32x384xf32>
    %c0_9 = arith.constant 0 : index
    %c0_10 = arith.constant 0 : index
    %9 = vector.load %arg2[%c0_9, %c0_10] : memref<384x128xf32, #tpu.memory_space<vmem>>, vector<384x128xf32>
    %cst_11 = arith.constant dense<0.000000e+00> : vector<32x128xf32>
    %10 = tpu.matmul %8, %9, %cst_11 {dimension_numbers = #tpu.dot_dimension_numbers<[1], [0], [0], [1], [0, 0, 1, 1], [], []>} : vector<32x384xf32>, vector<384x128xf32>, vector<32x128xf32> -> vector<32x128xf32>
    %11 = vector.extract_strided_slice %5 {offsets = [0, 0], sizes = [1, 128], strides = [1, 1]} : vector<4x128xf32> to vector<1x128xf32>
    %12 = vector.broadcast %11 : vector<1x128xf32> to vector<32x128xf32>
    %13 = arith.mulf %10, %12 : vector<32x128xf32>
    %14 = vector.extract_strided_slice %5 {offsets = [1, 0], sizes = [1, 128], strides = [1, 1]} : vector<4x128xf32> to vector<1x128xf32>
    %15 = vector.broadcast %14 : vector<1x128xf32> to vector<32x128xf32>
    %16 = arith.addf %13, %15 : vector<32x128xf32>
    %cst_12 = arith.constant 0.000000e+00 : f32
    %17 = vector.broadcast %cst_12 : f32 to vector<32x128xf32>
    %18 = arith.maximumf %16, %17 : vector<32x128xf32>
    %cst_13 = arith.constant dense<0.000000e+00> : vector<32x128xf32>
    %19 = tpu.matmul %2, %18, %cst_13 {dimension_numbers = #tpu.dot_dimension_numbers<[1], [0], [0], [1], [0, 0, 1, 1], [], []>} : vector<32x32xf32>, vector<32x128xf32>, vector<32x128xf32> -> vector<32x128xf32>
    %cst_14 = arith.constant dense<0.000000e+00> : vector<32x128xf32>
    %20 = tpu.matmul %4, %18, %cst_14 {dimension_numbers = #tpu.dot_dimension_numbers<[1], [0], [0], [1], [0, 0, 1, 1], [], []>} : vector<32x32xf32>, vector<32x128xf32>, vector<32x128xf32> -> vector<32x128xf32>
    %21 = tpu.concatenate %19, %18, %20 in 1 : vector<32x128xf32>, vector<32x128xf32>, vector<32x128xf32> -> vector<32x384xf32>
    %c0_15 = arith.constant 0 : index
    %c0_16 = arith.constant 0 : index
    %22 = vector.load %arg3[%c0_15, %c0_16] : memref<384x128xf32, #tpu.memory_space<vmem>>, vector<384x128xf32>
    %cst_17 = arith.constant dense<0.000000e+00> : vector<32x128xf32>
    %23 = tpu.matmul %21, %22, %cst_17 {dimension_numbers = #tpu.dot_dimension_numbers<[1], [0], [0], [1], [0, 0, 1, 1], [], []>} : vector<32x384xf32>, vector<384x128xf32>, vector<32x128xf32> -> vector<32x128xf32>
    %24 = vector.extract_strided_slice %5 {offsets = [2, 0], sizes = [1, 128], strides = [1, 1]} : vector<4x128xf32> to vector<1x128xf32>
    %25 = vector.broadcast %24 : vector<1x128xf32> to vector<32x128xf32>
    %26 = arith.mulf %23, %25 : vector<32x128xf32>
    %27 = vector.extract_strided_slice %5 {offsets = [3, 0], sizes = [1, 128], strides = [1, 1]} : vector<4x128xf32> to vector<1x128xf32>
    %28 = vector.broadcast %27 : vector<1x128xf32> to vector<32x128xf32>
    %29 = arith.addf %26, %28 : vector<32x128xf32>
    %30 = arith.addf %29, %0 : vector<32x128xf32>
    %cst_18 = arith.constant 0.000000e+00 : f32
    %31 = vector.broadcast %cst_18 : f32 to vector<32x128xf32>
    %32 = arith.maximumf %30, %31 : vector<32x128xf32>
    %c0_19 = arith.constant 0 : index
    %c0_20 = arith.constant 0 : index
    %33 = vector.load %arg6[%c0_19, %c0_20] : memref<32x128xf32, #tpu.memory_space<vmem>>, vector<32x128xf32>
    tpu.vector_store %arg6[%c0_19, %c0_20], %32 {strides = array<i32>} : memref<32x128xf32, #tpu.memory_space<vmem>>, vector<32x128xf32>,
    return
  }
  func.func @transform_0(%arg0: i32) -> (i32, i32) {
    %c0_i32 = arith.constant 0 : i32
    %c0_i32_0 = arith.constant 0 : i32
    %c0_i32_1 = arith.constant 0 : i32
    return %c0_i32, %c0_i32_0 : i32, i32
  }
  func.func @transform_1(%arg0: i32) -> (i32, i32) {
    %c0_i32 = arith.constant 0 : i32
    %c0_i32_0 = arith.constant 0 : i32
    %c0_i32_1 = arith.constant 0 : i32
    return %c0_i32, %c0_i32_0 : i32, i32
  }
  func.func @transform_2(%arg0: i32) -> (i32, i32) {
    %c0_i32 = arith.constant 0 : i32
    %c0_i32_0 = arith.constant 0 : i32
    %c0_i32_1 = arith.constant 0 : i32
    return %c0_i32, %c0_i32_0 : i32, i32
  }
  func.func @transform_3(%arg0: i32) -> (i32, i32) {
    %c0_i32 = arith.constant 0 : i32
    %c0_i32_0 = arith.constant 0 : i32
    %c0_i32_1 = arith.constant 0 : i32
    return %c0_i32, %c0_i32_0 : i32, i32
  }
  func.func @transform_4(%arg0: i32) -> (i32, i32, i32) {
    %c0_i32 = arith.constant 0 : i32
    %c0_i32_0 = arith.constant 0 : i32
    %c0_i32_1 = arith.constant 0 : i32
    %c0_i32_2 = arith.constant 0 : i32
    return %c0_i32, %c0_i32_0, %c0_i32_1 : i32, i32, i32
  }
  func.func @transform_5(%arg0: i32) -> (i32, i32) {
    %c0_i32 = arith.constant 0 : i32
    %c0_i32_0 = arith.constant 0 : i32
    %c0_i32_1 = arith.constant 0 : i32
    return %c0_i32, %c0_i32_0 : i32, i32
  }
}

</mosaic_0001>

<bundles_post_ra>
// kernel: tpu_custom_call.1
= control target key start
LH: loop header
LB: loop body
LE: loop exit
PB: predicated region body
PF: predicated region fallthrough
CT: control target
= control target key end

     0   :  { %10 = vsyncpa [#allocation3], 0  ;;  %s904_s0 = inlined_call_operand.hbm [shape: f32[32,128], index: 0, kind: input, shape index: {}]   ;;  %s905_s1 = inlined_call_operand.hbm [shape: f32[384,128], index: 1, kind: input, shape index: {}]   ;;  %s906_s2 = inlined_call_operand.hbm [shape: f32[384,128], index: 2, kind: input, shape index: {}]   ;;  %s907_s3 = inlined_call_operand.hbm [shape: f32[4,128], index: 3, kind: input, shape index: {}]   ;;  %s908_s4 = inlined_call_operand.hbm [shape: f32[2,32,32], index: 4, kind: input, shape index: {}]   ;;  %s909_s5 = inlined_call_operand.hbm [shape: f32[32,128], index: 5, kind: output, shape index: {}]  }
   0x1   :  { %11 = vsyncpa [#allocation6], 0 }
   0x2   :  { %12 = vsyncpa [#allocation9], 0 }
   0x3   :  { %13 = vsyncpa [#allocation4], 0  ;;  %s31_s20 = sshll.u32 %s905_s1, 4  ;;  %s755_s21 = smov [#allocation5]   ;;  %s32_s20 = int_to_ptr.hbm [resolvable:$true] %s31_s20 }
   0x4   :  { %s33_s22 = sshll.u32 %s755_s21, 4  ;;  %s58_s25 = sshll.u32 %s907_s3, 4  ;;  %s34_s22 = int_to_ptr.vmem [resolvable:$true] %s33_s22  ;;  %s59_s25 = int_to_ptr.hbm [resolvable:$true] %s58_s25 }
   0x5   :  { %s756_s26 = smov 128   ;;  %s757_s27 = smov 8  }
   0x6   :  { %39 = dma.hbm_to_vmem [thread:$0]  %s32_s20, 6144, %s34_s22, [#allocation6], %s756_s26, %s756_s26, %s757_s27  }
   0x7   :  { %s758_s28 = smov [#allocation8]   ;;  %s18_s1 = sshll.u32 %s904_s0, 4  ;;  %s19_s1 = int_to_ptr.hbm [resolvable:$true] %s18_s1 }
   0x8   :  { %s60_s29 = sshll.u32 %s758_s28, 4  ;;  %s44_s3 = sshll.u32 %s906_s2, 4  ;;  %s61_s29 = int_to_ptr.vmem [resolvable:$true] %s60_s29  ;;  %s45_s3 = int_to_ptr.hbm [resolvable:$true] %s44_s3 }
   0x9   :  { %63 = dma.hbm_to_vmem [thread:$0]  %s59_s25, 64, %s61_s29, [#allocation9]  }
   0xa   :  { %s759_s9 = smov [#allocation2]   ;;  %s760_s11 = smov [#allocation7]  }
   0xb   :  { %s20_s10 = sshll.u32 %s759_s9, 4  ;;  %s46_s12 = sshll.u32 %s760_s11, 4  ;;  %s21_s10 = int_to_ptr.vmem [resolvable:$true] %s20_s10  ;;  %s47_s12 = int_to_ptr.vmem [resolvable:$true] %s46_s12 }
   0xc   :  { %26 = dma.hbm_to_vmem [thread:$0]  %s19_s1, 512, %s21_s10, [#allocation3], %s756_s26, %s756_s26, %s757_s27  }
   0xd   :  { %s68_s0 = sshll.u32 %s908_s4, 4  ;;  %s761_s2 = smov [#allocation10]   ;;  %s69_s0 = int_to_ptr.hbm [resolvable:$true] %s68_s0 }
   0xe   :  { %52 = dma.hbm_to_vmem [thread:$0]  %s45_s3, 6144, %s47_s12, [#allocation6], %s756_s26, %s756_s26, %s757_s27  }
   0xf   :  { %s70_s15 = sshll.u32 %s761_s2, 4  ;;  %s71_s15 = int_to_ptr.vmem [resolvable:$true] %s70_s15 }
  0x10   :  { %76 = dma.hbm_to_vmem [thread:$0]  %s69_s0, 1024, %s71_s15, [#allocation9], %s756_s26, %s756_s26, %s757_s27  }
  0x11   :  { %747 = dma.done.wait [#allocation3], 512  }
  0x12   :  { %748 = vsyncadd [#allocation3], 4294966784 }
  0x13   :  { %749 = dma.done.wait [#allocation6], 12288  }
  0x14   :  { %750 = vsyncadd [#allocation6], 4294955008 }
  0x15   :  { %751 = dma.done.wait [#allocation9], 1088  }
  0x16   :  { %752 = vsyncadd [#allocation9], 4294966208  ;;  %v820_v0 = vld [vmem:[#allocation2 + $0x18] sm:$0xff]  ;;  %v822_v1 = vld [vmem:[#allocation2 + $0x10] sm:$0xff]  ;;  %vm111_vm0 = vcmask 261120   ;;  %s762_s4 = smov [#allocation11]  }
  0x17   :  { %136 = vmatpush.msra.mxu0 %v820_v0  ;;  %177 = vmatpush.msra.mxu1 %v820_v0  ;;  %v826_v2 = vld [vmem:[#allocation2 + $0x8] sm:$0xff]  ;;  %v830_v3 = vld [vmem:[#allocation2] sm:$0xff]  ;;  %v209_v4 = vld [vmem:[#allocation5 + $0x78] sm:$0xff]  ;;  %s562_s16 = sshll.u32 %s762_s4, 4  ;;  %s564_s19 = sshll.u32 %s909_s5, 4  ;;  %s563_s16 = int_to_ptr.vmem [resolvable:$true] %s562_s16  ;;  %s565_s19 = int_to_ptr.hbm [resolvable:$true] %s564_s19 }
  0x18   :  { %v225_v5 = vld [vmem:[#allocation5 + $0xf8] sm:$0xff]  ;;  %v833_v6 = vld [vmem:[#allocation10] sm:$0xff]  ;;  %242 = vmatpush.msra.mxu2 %v209_v4  ;;  %v208_v8 = vld [vmem:[#allocation5 + $0x70] sm:$0xff] }
  0x19   :  { %137 = vmatpush.msra.mxu0 %v822_v1  ;;  %178 = vmatpush.msra.mxu1 %v822_v1  ;;  %v836_v7 = vld [vmem:[#allocation10 + $0x20] sm:$0xff]  ;;  %v224_v9 = vld [vmem:[#allocation5 + $0xf0] sm:$0xff]  ;;  %v241_v10 = vld [vmem:[#allocation5 + $0x178] sm:$0xff] }
  0x1a   :  { %271 = vmatpush.msra.mxu3 %v225_v5  ;;  %v207_v11 = vld [vmem:[#allocation5 + $0x68] sm:$0xff]  ;;  %243 = vmatpush.msra.mxu2 %v208_v8  ;;  %v240_v13 = vld [vmem:[#allocation5 + $0x170] sm:$0xff]  ;;  %v206_v14 = vld [vmem:[#allocation5 + $0x60] sm:$0xff] }
  0x1b   :  { %138 = vmatpush.msra.mxu0 %v826_v2  ;;  %179 = vmatpush.msra.mxu1 %v826_v2  ;;  %v223_v12 = vld [vmem:[#allocation5 + $0xe8] sm:$0xff]  ;;  %v222_v15 = vld [vmem:[#allocation5 + $0xe0] sm:$0xff]  ;;  %v205_v17 = vld [vmem:[#allocation5 + $0x58] sm:$0xff] }
  0x1c   :  { %272 = vmatpush.msra.mxu3 %v224_v9  ;;  %244 = vmatpush.msra.mxu2 %v207_v11  ;;  %v239_v16 = vld [vmem:[#allocation5 + $0x168] sm:$0xff]  ;;  %v221_v18 = vld [vmem:[#allocation5 + $0xd8] sm:$0xff]  ;;  %v204_v21 = vld [vmem:[#allocation5 + $0x50] sm:$0xff] }
  0x1d   :  { %139 = vmatpush.msra.mxu0 %v830_v3  ;;  %180 = vmatpush.msra.mxu1 %v830_v3  ;;  %v844_v19 = vld [vmem:[#allocation10 + $0x8] sm:$0xff]  ;;  %v238_v23 = vld [vmem:[#allocation5 + $0x160] sm:$0xff]  ;;  %v237_v26 = vld [vmem:[#allocation5 + $0x158] sm:$0xff] }
  0x1e   :  { %579 = vmatmul.msk.f32.vlgmr.msra.gmra.mxu0 %vm111_vm0, %v833_v6  ;;  %583 = vmatmul.msk.f32.vlgmr.msra.gmra.mxu1 %vm111_vm0, %v836_v7  ;;  %v846_v20 = vld [vmem:[#allocation10 + $0x28] sm:$0xff]  ;;  %v202_v27 = vld [vmem:[#allocation5 + $0x40] sm:$0xff]  ;;  %v201_v30 = vld [vmem:[#allocation5 + $0x38] sm:$0xff] }
  0x1f   :  { %300 = vmatpush.msrb.mxu0 %v241_v10  ;;  %273 = vmatpush.msra.mxu3 %v223_v12  ;;  %v220_v22 = vld [vmem:[#allocation5 + $0xd0] sm:$0xff]  ;;  %v203_v24 = vld [vmem:[#allocation5 + $0x48] sm:$0xff]  ;;  %v218_v28 = vld [vmem:[#allocation5 + $0xc0] sm:$0xff] }
  0x20   :  { %245 = vmatpush.msra.mxu2 %v206_v14  ;;  %v219_v25 = vld [vmem:[#allocation5 + $0xc8] sm:$0xff]  ;;  %v236_v29 = vld [vmem:[#allocation5 + $0x150] sm:$0xff]  ;;  %v217_v31 = vld [vmem:[#allocation5 + $0xb8] sm:$0xff] }
  0x21   :  { %301 = vmatpush.msrb.mxu0 %v240_v13  ;;  %274 = vmatpush.msra.mxu3 %v222_v15  ;;  %v852_v32 = vld [vmem:[#allocation10 + $0x10] sm:$0xff]  ;;  %v235_v36 = vld [vmem:[#allocation5 + $0x148] sm:$0xff]  ;;  %v234_v39 = vld [vmem:[#allocation5 + $0x140] sm:$0xff] }
  0x22   :  { %246 = vmatpush.msra.mxu2 %v205_v17  ;;  %v854_v33 = vld [vmem:[#allocation10 + $0x30] sm:$0xff]  ;;  %v199_v37 = vld [vmem:[#allocation5 + $0x28] sm:$0xff]  ;;  %v198_v40 = vld [vmem:[#allocation5 + $0x20] sm:$0xff] }
  0x23   :  { %302 = vmatpush.msrb.mxu0 %v239_v16  ;;  %275 = vmatpush.msra.mxu3 %v221_v18  ;;  %v200_v34 = vld [vmem:[#allocation5 + $0x30] sm:$0xff]  ;;  %v215_v38 = vld [vmem:[#allocation5 + $0xa8] sm:$0xff]  ;;  %v214_v41 = vld [vmem:[#allocation5 + $0xa0] sm:$0xff] }
  0x24   :  { %247 = vmatpush.msra.mxu2 %v204_v21  ;;  %v216_v35 = vld [vmem:[#allocation5 + $0xb0] sm:$0xff]  ;;  %v233_v42 = vld [vmem:[#allocation5 + $0x138] sm:$0xff]  ;;  %v195_v50 = vld [vmem:[#allocation5 + $0x8] sm:$0xff] }
  0x25   :  { %276 = vmatpush.msra.mxu3 %v220_v22  ;;  %303 = vmatpush.msrb.mxu0 %v238_v23  ;;  %v197_v43 = vld [vmem:[#allocation5 + $0x18] sm:$0xff]  ;;  %v196_v47 = vld [vmem:[#allocation5 + $0x10] sm:$0xff]  ;;  %v211_v51 = vld [vmem:[#allocation5 + $0x88] sm:$0xff] }
  0x26   :  { %580 = vmatmul.msk.f32.gmra.mxu0 %vm111_vm0, %v844_v19  ;;  %584 = vmatmul.msk.f32.gmra.mxu1 %vm111_vm0, %v846_v20  ;;  %v213_v44 = vld [vmem:[#allocation5 + $0x98] sm:$0xff]  ;;  %v212_v48 = vld [vmem:[#allocation5 + $0x90] sm:$0xff]  ;;  %v231_v52 = vld [vmem:[#allocation5 + $0x128] sm:$0xff] }
  0x27   :  { %248 = vmatpush.msra.mxu2 %v203_v24  ;;  %277 = vmatpush.msra.mxu3 %v219_v25  ;;  %v860_v45 = vld [vmem:[#allocation10 + $0x18] sm:$0xff]  ;;  %v232_v49 = vld [vmem:[#allocation5 + $0x130] sm:$0xff]  ;;  %v227_v58 = vld [vmem:[#allocation5 + $0x108] sm:$0xff] }
  0x28   :  { %304 = vmatpush.msrb.mxu0 %v237_v26  ;;  %v862_v46 = vld [vmem:[#allocation10 + $0x38] sm:$0xff]  ;;  %v228_v57 = vld [vmem:[#allocation5 + $0x110] sm:$0xff]  ;;  %v430_v62 = vld [vmem:[#allocation7 + $0xe8] sm:$0xff] }
  0x29   :  { %249 = vmatpush.msra.mxu2 %v202_v27  ;;  %278 = vmatpush.msra.mxu3 %v218_v28  ;;  %v194_v53 = vld [vmem:[#allocation5] sm:$0xff]  ;;  %v229_v56 = vld [vmem:[#allocation5 + $0x118] sm:$0xff]  ;;  %v431_v61 = vld [vmem:[#allocation7 + $0xf0] sm:$0xff] }
  0x2a   :  { %305 = vmatpush.msrb.mxu0 %v236_v29  ;;  %v210_v54 = vld [vmem:[#allocation5 + $0x80] sm:$0xff]  ;;  %v432_v60 = vld [vmem:[#allocation7 + $0xf8] sm:$0xff]  ;;  %v427_v9 = vld [vmem:[#allocation7 + $0xd0] sm:$0xff] }
  0x2b   :  { %250 = vmatpush.msra.mxu2 %v201_v30  ;;  %279 = vmatpush.msra.mxu3 %v217_v31  ;;  %v230_v55 = vld [vmem:[#allocation5 + $0x120] sm:$0xff]  ;;  %v428_v4 = vld [vmem:[#allocation7 + $0xd8] sm:$0xff]  ;;  %v426_v10 = vld [vmem:[#allocation7 + $0xc8] sm:$0xff] }
  0x2c   :  { %306 = vmatpush.msrb.mxu0 %v235_v36  ;;  %v226_v59 = vld [vmem:[#allocation5 + $0x100] sm:$0xff]  ;;  %v424_v12 = vld [vmem:[#allocation7 + $0xb8] sm:$0xff]  ;;  %v423_v15 = vld [vmem:[#allocation7 + $0xb0] sm:$0xff] }
  0x2d   :  { %251 = vmatpush.msra.mxu2 %v200_v34  ;;  %280 = vmatpush.msra.mxu3 %v216_v35  ;;  %v429_v63 = vld [vmem:[#allocation7 + $0xe0] sm:$0xff]  ;;  %v422_v22 = vld [vmem:[#allocation7 + $0xa8] sm:$0xff]  ;;  %v420_v24 = vld [vmem:[#allocation7 + $0x98] sm:$0xff] }
  0x2e   :  { %581 = vmatmul.msk.f32.gmra.mxu0 %vm111_vm0, %v852_v32  ;;  %585 = vmatmul.msk.f32.gmra.mxu1 %vm111_vm0, %v854_v33  ;;  %v425_v11 = vld [vmem:[#allocation7 + $0xc0] sm:$0xff]  ;;  %v419_v25 = vld [vmem:[#allocation7 + $0x90] sm:$0xff]  ;;  %v418_v26 = vld [vmem:[#allocation7 + $0x88] sm:$0xff] }
  0x2f   :  { %252 = vmatpush.msra.mxu2 %v199_v37  ;;  %281 = vmatpush.msra.mxu3 %v215_v38  ;;  %v421_v23 = vld [vmem:[#allocation7 + $0xa0] sm:$0xff] }
  0x30   :  { %307 = vmatpush.msrb.mxu0 %v234_v39  ;;  %v417_v27 = vld [vmem:[#allocation7 + $0x80] sm:$0xff] }
  0x31   :  { %253 = vmatpush.msra.mxu2 %v198_v40  ;;  %282 = vmatpush.msra.mxu3 %v214_v41  ;;  %v872_v30 = vld [vmem:[#allocation8] sm:$0xf] }
  0x32   :  { %308 = vmatpush.msrb.mxu0 %v233_v42  ;;  %v329_v35 = vperm.slane %v872_v30, 0  ;;  %v334_v38 = vperm.slane %v872_v30, 1 }
  0x33   :  { %254 = vmatpush.msra.mxu2 %v197_v43  ;;  %283 = vmatpush.msra.mxu3 %v213_v44 }
  0x34   :  { %309 = vmatpush.msrb.mxu0 %v232_v49 }
  0x35   :  { %255 = vmatpush.msra.mxu2 %v196_v47  ;;  %284 = vmatpush.msra.mxu3 %v212_v48 }
  0x36   :  { %582 = vmatmul.msk.f32.gmra.mxu0 %vm111_vm0, %v860_v45  ;;  %586 = vmatmul.msk.f32.gmra.mxu1 %vm111_vm0, %v862_v46 }
  0x37   :  { %256 = vmatpush.msra.mxu2 %v195_v50  ;;  %285 = vmatpush.msra.mxu3 %v211_v51 }
  0x38   :  { %310 = vmatpush.msrb.mxu0 %v231_v52 }
  0x39   :  { %257 = vmatpush.msra.mxu2 %v194_v53  ;;  %286 = vmatpush.msra.mxu3 %v210_v54 }
  0x3a   :  { %311 = vmatpush.msrb.mxu0 %v230_v55  ;;  %287 = vmatmul.f32.vlgmr.msra.gmra.mxu3 %v830_v3 }
  0x3c   :  { %312 = vmatpush.msrb.mxu0 %v229_v56 }
  0x3e   :  { %313 = vmatpush.msrb.mxu0 %v228_v57 }
  0x40   :  { %314 = vmatpush.msrb.mxu0 %v227_v58 }
  0x42   :  { %315 = vmatpush.msrb.mxu0 %v226_v59  ;;  %290 = vmatmul.f32.gmra.mxu3 %v826_v2 }
  0x44   :  { %478 = vmatpush.msra.mxu0 %v432_v60 }
  0x46   :  { %479 = vmatpush.msra.mxu0 %v431_v61 }
  0x48   :  { %480 = vmatpush.msra.mxu0 %v430_v62 }
  0x4a   :  { %293 = vmatmul.f32.gmra.mxu3 %v822_v1  ;;  %481 = vmatpush.msra.mxu0 %v429_v63 }
  0x4c   :  { %482 = vmatpush.msra.mxu0 %v428_v4 }
  0x4e   :  { %483 = vmatpush.msra.mxu0 %v427_v9  ;;  %v414_v9 = vld [vmem:[#allocation7 + $0x68] sm:$0xff] }
  0x50   :  { %484 = vmatpush.msra.mxu0 %v426_v10  ;;  %v448_v10 = vld [vmem:[#allocation7 + $0x178] sm:$0xff] }
  0x52   :  { %296 = vmatmul.f32.gmra.mxu3 %v820_v0  ;;  %485 = vmatpush.msra.mxu0 %v425_v11  ;;  %v410_v11 = vld [vmem:[#allocation7 + $0x48] sm:$0xff] }
  0x54   :  { %486 = vmatpush.msra.mxu0 %v424_v12  ;;  %v446_v12 = vld [vmem:[#allocation7 + $0x168] sm:$0xff] }
  0x56   :  { %487 = vmatpush.msra.mxu0 %v423_v15  ;;  %v407_v15 = vld [vmem:[#allocation7 + $0x30] sm:$0xff] }
  0x58   :  { %488 = vmatpush.msra.mxu0 %v422_v22  ;;  %v441_v22 = vld [vmem:[#allocation7 + $0x140] sm:$0xff] }
  0x5a   :  { %489 = vmatpush.msra.mxu0 %v421_v23  ;;  %v404_v23 = vld [vmem:[#allocation7 + $0x18] sm:$0xff] }
  0x5c   :  { %490 = vmatpush.msra.mxu0 %v420_v24  ;;  %v440_v24 = vld [vmem:[#allocation7 + $0x138] sm:$0xff] }
  0x5e   :  { %491 = vmatpush.msra.mxu0 %v419_v25  ;;  %v403_v25 = vld [vmem:[#allocation7 + $0x10] sm:$0xff] }
  0x60   :  { %492 = vmatpush.msra.mxu0 %v418_v26  ;;  %v439_v26 = vld [vmem:[#allocation7 + $0x130] sm:$0xff] }
  0x62   :  { %493 = vmatpush.msra.mxu0 %v417_v27  ;;  %v402_v27 = vld [vmem:[#allocation7 + $0x8] sm:$0xff] }
  0x9b   :  { %v141_v5 = vpop.f32.mrf.mxu0  ;;  %v182_v8 = vpop.f32.mrf.mxu1 }
  0x9c   :  { %258 = vmatmul.f32.vlgmr.msra.gmra.mxu2 %v141_v5  ;;  %316 = vmatmul.f32.vlgmr.msrb.gmra.mxu0 %v182_v8 }
  0xa3   :  { %v144_v13 = vpop.f32.mrf.mxu0  ;;  %v185_v14 = vpop.f32.mrf.mxu1 }
  0xa4   :  { %261 = vmatmul.f32.gmra.mxu2 %v144_v13  ;;  %319 = vmatmul.f32.gmra.mxu0 %v185_v14  ;;  %v408_v13 = vld [vmem:[#allocation7 + $0x38] sm:$0xff] }
  0xa5   :  { %v444_v14 = vld [vmem:[#allocation7 + $0x158] sm:$0xff] }
  0xab   :  { %v147_v16 = vpop.f32.mrf.mxu0  ;;  %v188_v17 = vpop.f32.mrf.mxu1 }
  0xac   :  { %264 = vmatmul.f32.gmra.mxu2 %v147_v16  ;;  %322 = vmatmul.f32.gmra.mxu0 %v188_v17  ;;  %v443_v16 = vld [vmem:[#allocation7 + $0x150] sm:$0xff]  ;;  %v406_v17 = vld [vmem:[#allocation7 + $0x28] sm:$0xff] }
  0xb3   :  { %v150_v18 = vpop.f32.mrf.mxu0  ;;  %v191_v21 = vpop.f32.mrf.mxu1 }
  0xb4   :  { %267 = vmatmul.f32.gmra.mxu2 %v150_v18  ;;  %325 = vmatmul.f32.gmra.mxu0 %v191_v21  ;;  %v442_v18 = vld [vmem:[#allocation7 + $0x148] sm:$0xff]  ;;  %v405_v21 = vld [vmem:[#allocation7 + $0x20] sm:$0xff] }
  0xbd   :  { %v288_v28 = vpop.f32.mrf.mxu3 }
  0xc5   :  { %v291_v36 = vpop.f32.mrf.mxu3 }
  0xcd   :  { %v294_v48 = vpop.f32.mrf.mxu3 }
  0xd5   :  { %v297_v57 = vpop.f32.mrf.mxu3 }
 0x119   :  { %v317_v29 = vpop.f32.mrf.mxu0 }
 0x11f   :  { %v259_v31 = vpop.f32.mrf.mxu2 }
 0x120   :  { %v289_v34 = vadd.f32 %v288_v28, %v259_v31  ;;  %v438_v28 = vld [vmem:[#allocation7 + $0x128] sm:$0xff]  ;;  %v437_v31 = vld [vmem:[#allocation7 + $0x120] sm:$0xff] }
 0x121   :  { %v320_v39 = vpop.f32.mrf.mxu0 }
 0x122   :  { %v318_v37 = vadd.f32 %v317_v29, %v289_v34  ;;  %v401_v29 = vld [vmem:[#allocation7] sm:$0xff]  ;;  %v436_v34 = vld [vmem:[#allocation7 + $0x118] sm:$0xff] }
 0x124   :  { %v330_v40 = vmul.f32 %v329_v35, %v318_v37  ;;  %v433_v37 = vld [vmem:[#allocation7 + $0x100] sm:$0xff] }
 0x126   :  { %v335_v41 = vadd.f32 %v334_v38, %v330_v40 }
 0x127   :  { %v262_v42 = vpop.f32.mrf.mxu2 }
 0x128   :  { %v339_v43 = vmax.f32 %v335_v41, 0.0  ;;  %v292_v44 = vadd.f32 %v291_v36, %v262_v42  ;;  %v434_v36 = vld [vmem:[#allocation7 + $0x108] sm:$0xff] }
 0x129   :  { %v323_v50 = vpop.f32.mrf.mxu0 }
 0x12a   :  { %v321_v47 = vadd.f32 %v320_v39, %v292_v44  ;;  %494 = vmatmul.f32.vlgmr.msra.gmra.mxu0 %v339_v43 }
 0x12c   :  { %v331_v49 = vmul.f32 %v329_v35, %v321_v47 }
 0x12e   :  { %v336_v51 = vadd.f32 %v334_v38, %v331_v49 }
 0x12f   :  { %v265_v52 = vpop.f32.mrf.mxu2 }
 0x130   :  { %v295_v53 = vadd.f32 %v294_v48, %v265_v52  ;;  %v340_v54 = vmax.f32 %v336_v51, 0.0  ;;  %v536_v52 = vperm.slane %v872_v30, 2 }
 0x131   :  { %v326_v60 = vpop.f32.mrf.mxu0 }
 0x132   :  { %v324_v55 = vadd.f32 %v323_v50, %v295_v53  ;;  %497 = vmatmul.f32.gmra.mxu0 %v340_v54 }
 0x134   :  { %v332_v56 = vmul.f32 %v329_v35, %v324_v55  ;;  %v541_v55 = vperm.slane %v872_v30, 3 }
 0x136   :  { %v337_v58 = vadd.f32 %v334_v38, %v332_v56 }
 0x137   :  { %v268_v59 = vpop.f32.mrf.mxu2 }
 0x138   :  { %v298_v61 = vadd.f32 %v297_v57, %v268_v59  ;;  %v341_v62 = vmax.f32 %v337_v58, 0.0 }
 0x13a   :  { %v327_v63 = vadd.f32 %v326_v60, %v298_v61  ;;  %500 = vmatmul.f32.gmra.mxu0 %v341_v62 }
 0x13c   :  { %v333_v4 = vmul.f32 %v329_v35, %v327_v63  ;;  %v435_v35 = vld [vmem:[#allocation7 + $0x110] sm:$0xff] }
 0x13e   :  { %v338_v5 = vadd.f32 %v334_v38, %v333_v4 }
 0x140   :  { %v342_v8 = vmax.f32 %v338_v5, 0.0 }
 0x142   :  { %355 = vmatpush.msrb.mxu1 %v342_v8  ;;  %384 = vmatpush.msrb.mxu2 %v342_v8 }
 0x143   :  { %503 = vmatmul.f32.gmra.mxu0 %v342_v8 }
 0x144   :  { %356 = vmatpush.msrb.mxu1 %v341_v62  ;;  %385 = vmatpush.msrb.mxu2 %v341_v62 }
 0x146   :  { %357 = vmatpush.msrb.mxu1 %v340_v54  ;;  %386 = vmatpush.msrb.mxu2 %v340_v54 }
 0x148   :  { %358 = vmatpush.msrb.mxu1 %v339_v43  ;;  %387 = vmatpush.msrb.mxu2 %v339_v43 }
 0x149   :  { %587 = vmatmul.msk.f32.vlgmr.msrb.gmra.mxu1 %vm111_vm0, %v833_v6  ;;  %591 = vmatmul.msk.f32.vlgmr.msrb.gmra.mxu2 %vm111_vm0, %v836_v7  ;;  %v416_v6 = vld [vmem:[#allocation7 + $0x78] sm:$0xff]  ;;  %v415_v7 = vld [vmem:[#allocation7 + $0x70] sm:$0xff] }
 0x14a   :  { %449 = vmatpush.msrb.mxu3 %v416_v6  ;;  %507 = vmatpush.msra.mxu1 %v448_v10 }
 0x14c   :  { %450 = vmatpush.msrb.mxu3 %v415_v7 }
 0x14e   :  { %451 = vmatpush.msrb.mxu3 %v414_v9 }
 0x151   :  { %588 = vmatmul.msk.f32.gmra.mxu1 %vm111_vm0, %v844_v19  ;;  %592 = vmatmul.msk.f32.gmra.mxu2 %vm111_vm0, %v846_v20  ;;  %v413_v19 = vld [vmem:[#allocation7 + $0x60] sm:$0xff]  ;;  %v412_v20 = vld [vmem:[#allocation7 + $0x58] sm:$0xff] }
 0x152   :  { %452 = vmatpush.msrb.mxu3 %v413_v19 }
 0x154   :  { %453 = vmatpush.msrb.mxu3 %v412_v20 }
 0x159   :  { %589 = vmatmul.msk.f32.gmra.mxu1 %vm111_vm0, %v852_v32  ;;  %593 = vmatmul.msk.f32.gmra.mxu2 %vm111_vm0, %v854_v33  ;;  %v411_v32 = vld [vmem:[#allocation7 + $0x50] sm:$0xff] }
 0x15a   :  { %v447_v33 = vld [vmem:[#allocation7 + $0x170] sm:$0xff]  ;;  %454 = vmatpush.msrb.mxu3 %v411_v32 }
 0x15b   :  { %508 = vmatpush.msra.mxu1 %v447_v33 }
 0x15c   :  { %455 = vmatpush.msrb.mxu3 %v410_v11 }
 0x15d   :  { %509 = vmatpush.msra.mxu1 %v446_v12 }
 0x161   :  { %590 = vmatmul.msk.f32.gmra.mxu1 %vm111_vm0, %v860_v45  ;;  %594 = vmatmul.msk.f32.gmra.mxu2 %vm111_vm0, %v862_v46  ;;  %v409_v45 = vld [vmem:[#allocation7 + $0x40] sm:$0xff] }
 0x162   :  { %v445_v46 = vld [vmem:[#allocation7 + $0x160] sm:$0xff]  ;;  %456 = vmatpush.msrb.mxu3 %v409_v45 }
 0x163   :  { %510 = vmatpush.msra.mxu1 %v445_v46 }
 0x164   :  { %457 = vmatpush.msrb.mxu3 %v408_v13 }
 0x165   :  { %511 = vmatpush.msra.mxu1 %v444_v14 }
 0x166   :  { %458 = vmatpush.msrb.mxu3 %v407_v15 }
 0x167   :  { %512 = vmatpush.msra.mxu1 %v443_v16 }
 0x168   :  { %459 = vmatpush.msrb.mxu3 %v406_v17 }
 0x169   :  { %513 = vmatpush.msra.mxu1 %v442_v18 }
 0x16a   :  { %460 = vmatpush.msrb.mxu3 %v405_v21 }
 0x16b   :  { %514 = vmatpush.msra.mxu1 %v441_v22 }
 0x16c   :  { %461 = vmatpush.msrb.mxu3 %v404_v23 }
 0x16d   :  { %515 = vmatpush.msra.mxu1 %v440_v24 }
 0x16e   :  { %462 = vmatpush.msrb.mxu3 %v403_v25 }
 0x16f   :  { %516 = vmatpush.msra.mxu1 %v439_v26 }
 0x170   :  { %463 = vmatpush.msrb.mxu3 %v402_v27 }
 0x171   :  { %517 = vmatpush.msra.mxu1 %v438_v28 }
 0x172   :  { %464 = vmatpush.msrb.mxu3 %v401_v29 }
 0x173   :  { %518 = vmatpush.msra.mxu1 %v437_v31 }
 0x175   :  { %519 = vmatpush.msra.mxu1 %v436_v34 }
 0x177   :  { %520 = vmatpush.msra.mxu1 %v435_v35 }
 0x179   :  { %521 = vmatpush.msra.mxu1 %v434_v36 }
 0x17b   :  { %522 = vmatpush.msra.mxu1 %v433_v37 }
 0x1a7   :  { %v495_v48 = vpop.f32.mrf.mxu0 }
 0x1af   :  { %v498_v53 = vpop.f32.mrf.mxu0 }
 0x1b7   :  { %v501_v4 = vpop.f32.mrf.mxu0 }
 0x1c0   :  { %v504_v32 = vpop.f32.mrf.mxu0 }
 0x1c6   :  { %v360_v38 = vpop.f32.mrf.mxu1 }
 0x1c7   :  { %465 = vmatmul.f32.vlgmr.msrb.gmra.mxu3 %v360_v38 }
 0x1cc   :  { %v389_v39 = vpop.f32.mrf.mxu2 }
 0x1cd   :  { %523 = vmatmul.f32.vlgmr.msra.gmra.mxu1 %v389_v39 }
 0x1ce   :  { %v363_v40 = vpop.f32.mrf.mxu1 }
 0x1cf   :  { %468 = vmatmul.f32.gmra.mxu3 %v363_v40 }
 0x1d4   :  { %v392_v41 = vpop.f32.mrf.mxu2 }
 0x1d5   :  { %526 = vmatmul.f32.gmra.mxu1 %v392_v41 }
 0x1d6   :  { %v366_v42 = vpop.f32.mrf.mxu1 }
 0x1d7   :  { %471 = vmatmul.f32.gmra.mxu3 %v366_v42 }
 0x1dc   :  { %v395_v43 = vpop.f32.mrf.mxu2 }
 0x1dd   :  { %529 = vmatmul.f32.gmra.mxu1 %v395_v43 }
 0x1de   :  { %v369_v44 = vpop.f32.mrf.mxu1 }
 0x1df   :  { %474 = vmatmul.f32.gmra.mxu3 %v369_v44 }
 0x1e4   :  { %v398_v47 = vpop.f32.mrf.mxu2 }
 0x1e5   :  { %532 = vmatmul.f32.gmra.mxu1 %v398_v47 }
 0x24a   :  { %v466_v49 = vpop.f32.mrf.mxu3  ;;  %v524_v50 = vpop.f32.mrf.mxu1 }
 0x24b   :  { %v496_v51 = vadd.f32 %v495_v48, %v466_v49 }
 0x24d   :  { %v525_v54 = vadd.f32 %v524_v50, %v496_v51 }
 0x24f   :  { %v537_v56 = vmul.f32 %v536_v52, %v525_v54 }
 0x251   :  { %v542_v57 = vadd.f32 %v541_v55, %v537_v56 }
 0x252   :  { %v469_v58 = vpop.f32.mrf.mxu3  ;;  %v527_v59 = vpop.f32.mrf.mxu1 }
 0x253   :  { %v546_v60 = vadd.f32 %v542_v57, %v830_v3  ;;  %v499_v61 = vadd.f32 %v498_v53, %v469_v58 }
 0x255   :  { %v550_v62 = vmax.f32 %v546_v60, 0.0  ;;  %v528_v63 = vadd.f32 %v527_v59, %v499_v61 }
 0x257   :  { %554 = vst [vmem:[#allocation11] sm:$0xff] %v550_v62  ;;  %v538_v5 = vmul.f32 %v536_v52, %v528_v63 }
 0x259   :  { %v543_v8 = vadd.f32 %v541_v55, %v538_v5 }
 0x25a   :  { %v472_v6 = vpop.f32.mrf.mxu3  ;;  %v530_v7 = vpop.f32.mrf.mxu1 }
 0x25b   :  { %v547_v9 = vadd.f32 %v543_v8, %v826_v2  ;;  %v502_v19 = vadd.f32 %v501_v4, %v472_v6 }
 0x25d   :  { %v551_v20 = vmax.f32 %v547_v9, 0.0  ;;  %v531_v30 = vadd.f32 %v530_v7, %v502_v19 }
 0x25f   :  { %555 = vst [vmem:[#allocation11 + $0x8] sm:$0xff] %v551_v20  ;;  %v539_v10 = vmul.f32 %v536_v52, %v531_v30 }
 0x261   :  { %v544_v33 = vadd.f32 %v541_v55, %v539_v10 }
 0x262   :  { %v475_v11 = vpop.f32.mrf.mxu3  ;;  %v533_v3 = vpop.f32.mrf.mxu1 }
 0x263   :  { %v548_v12 = vadd.f32 %v544_v33, %v822_v1  ;;  %v505_v45 = vadd.f32 %v504_v32, %v475_v11 }
 0x265   :  { %v552_v46 = vmax.f32 %v548_v12, 0.0  ;;  %v534_v13 = vadd.f32 %v533_v3, %v505_v45 }
 0x267   :  { %556 = vst [vmem:[#allocation11 + $0x10] sm:$0xff] %v552_v46  ;;  %v540_v14 = vmul.f32 %v536_v52, %v534_v13 }
 0x269   :  { %v545_v15 = vadd.f32 %v541_v55, %v540_v14 }
 0x26b   :  { %v549_v2 = vadd.f32 %v545_v15, %v820_v0 }
 0x26d   :  { %v553_v16 = vmax.f32 %v549_v2, 0.0 }
 0x26f   :  { %557 = vst [vmem:[#allocation11 + $0x18] sm:$0xff] %v553_v16 }
 0x270   :  { %570 = dma.vmem_to_hbm [thread:$0]  %s563_s16, 512, %s565_s19, [#allocation4], %s756_s26, %s756_s26, %s757_s27  }
 0x271   :  { %753 = dma.done.wait [#allocation4], 512  }
 0x272   :  { %754 = vsyncadd [#allocation4], 4294966784 }
 0x273   :  { %575 = vsyncpa [#allocation3], 1 }
 0x274   :  { %576 = vsyncpa [#allocation6], 1 }
 0x275   :  { %577 = vsyncpa [#allocation9], 1 }
 0x276   :  { %578 = vsyncpa [#allocation4], 1 }

</bundles_post_ra>
